<compile_context>
chip_gen: v7x
topology: tpu7x:2x2x1
jax: 0.10.0
libtpu: 0.0.40
codegen_flags: <defaults>
</compile_context>

<pallas_src>
import functools

import jax
import jax.numpy as jnp
from jax import lax
from jax.experimental import pallas as pl
from jax.experimental.pallas import tpu as pltpu


# ----------------------------------------------------------------------------
# Helpers
# ----------------------------------------------------------------------------
def _pick_tile(dim, candidates):
    """Largest candidate tile that evenly divides `dim`, else the full dim."""
    for c in candidates:
        if c <= dim and dim % c == 0:
            return c
    return dim


def _cparams(*semantics):
    return pltpu.CompilerParams(
        dimension_semantics=semantics,
        vmem_limit_bytes=48 * 1024 * 1024,   # fits every generation incl. v7x
    )


# ----------------------------------------------------------------------------
# Fused (LayerNorm?) -> matmul -> bias -> (GELU?) -> (+residual?) kernel
# ----------------------------------------------------------------------------
def _fused_linear_kernel(x_ref, w_ref, b_ref, *rest,
                         has_ln, has_res, activation, eps):
    pos = 0
    if has_ln:
        g_ref, bln_ref = rest[0], rest[1]
        pos = 2
    if has_res:
        r_ref = rest[pos]
        pos += 1
    o_ref = rest[pos]

    x = x_ref[...].astype(jnp.float32)                       # [tm, K]
    if has_ln:
        mu = jnp.mean(x, axis=-1, keepdims=True)
        var = jnp.mean((x - mu) * (x - mu), axis=-1, keepdims=True)
        x = (x - mu) * lax.rsqrt(var + eps)
        x = x * g_ref[...].astype(jnp.float32) + bln_ref[...].astype(jnp.float32)

    # bf16 MXU operands, f32 accumulation
    acc = jnp.dot(x.astype(jnp.bfloat16), w_ref[...].astype(jnp.bfloat16),
                  preferred_element_type=jnp.float32)         # [tm, tn]
    acc = acc + b_ref[...].astype(jnp.float32)

    if activation == "gelu":
        acc = 0.5 * acc * (1.0 + jnp.tanh(
            0.7978845608028654 * (acc + 0.044715 * acc * acc * acc)))

    if has_res:
        acc = acc + r_ref[...].astype(jnp.float32)

    o_ref[...] = acc.astype(o_ref.dtype)


def fused_linear(x, w, b, *, ln=None, residual=None, activation=None,
                 out_dtype=jnp.bfloat16):
    """x: [M, K], w: [K, N], b: [N] -> [M, N].

    ln:       optional (gamma[K], beta[K]) applied to x rows before the matmul.
    residual: optional [M, N] tensor added after bias/activation.
    """
    M, K = x.shape
    K2, N = w.shape
    assert K == K2
    tm = _pick_tile(M, (256, 128, 64, 32, 16, 8))
    tn = _pick_tile(N, (512, 256, 128))
    grid = (M // tm, N // tn)

    in_specs = [
        pl.BlockSpec((tm, K), lambda i, j: (i, 0)),
        pl.BlockSpec((K, tn), lambda i, j: (0, j)),
        pl.BlockSpec((1, tn), lambda i, j: (0, j)),
    ]
    args = [x, w, b.reshape(1, N)]

    if ln is not None:
        g, bb = ln
        in_specs += [pl.BlockSpec((1, K), lambda i, j: (0, 0)),
                     pl.BlockSpec((1, K), lambda i, j: (0, 0))]
        args += [g.reshape(1, K), bb.reshape(1, K)]
    if residual is not None:
        in_specs.append(pl.BlockSpec((tm, tn), lambda i, j: (i, j)))
        args.append(residual)

    return pl.pallas_call(
        functools.partial(_fused_linear_kernel,
                          has_ln=ln is not None,
                          has_res=residual is not None,
                          activation=activation,
                          eps=1e-6),
        out_shape=jax.ShapeDtypeStruct((M, N), out_dtype),
        grid=grid,
        in_specs=in_specs,
        out_specs=pl.BlockSpec((tm, tn), lambda i, j: (i, j)),
        compiler_params=_cparams("parallel", "parallel"),
    )(*args)


# ----------------------------------------------------------------------------
# Standalone (tiled) LayerNorm kernel -- only used where no matmul follows
# ----------------------------------------------------------------------------
def _layernorm_kernel(x_ref, g_ref, b_ref, o_ref, *, eps):
    x = x_ref[...].astype(jnp.float32)
    mu = jnp.mean(x, axis=-1, keepdims=True)
    var = jnp.mean((x - mu) * (x - mu), axis=-1, keepdims=True)
    xn = (x - mu) * lax.rsqrt(var + eps)
    o_ref[...] = (xn * g_ref[...].astype(jnp.float32)
                  + b_ref[...].astype(jnp.float32)).astype(o_ref.dtype)


def layernorm(x, gamma, beta):
    """x: [M, D] -> [M, D] (f32 out: used for the final representations)."""
    M, D = x.shape
    tm = _pick_tile(M, (512, 256, 128, 64, 32, 16, 8))
    return pl.pallas_call(
        functools.partial(_layernorm_kernel, eps=1e-6),
        out_shape=jax.ShapeDtypeStruct((M, D), jnp.float32),
        grid=(M // tm,),
        in_specs=[pl.BlockSpec((tm, D), lambda i: (i, 0)),
                  pl.BlockSpec((1, D), lambda i: (0, 0)),
                  pl.BlockSpec((1, D), lambda i: (0, 0))],
        out_specs=pl.BlockSpec((tm, D), lambda i: (i, 0)),
        compiler_params=_cparams("parallel"),
    )(x, gamma.reshape(1, D), beta.reshape(1, D))


# ----------------------------------------------------------------------------
# Multi-head attention over packed qkv (all heads per grid step)
# ----------------------------------------------------------------------------
def _attn_kernel(qkv_ref, o_ref, *, num_heads, head_dim, scale):
    qkv = qkv_ref[0]                                   # [N, 3D]
    D = num_heads * head_dim
    outs = []
    for h in range(num_heads):
        q = qkv[:, h * head_dim:(h + 1) * head_dim].astype(jnp.float32) * scale
        k = qkv[:, D + h * head_dim:D + (h + 1) * head_dim]
        v = qkv[:, 2 * D + h * head_dim:2 * D + (h + 1) * head_dim]
        # q @ k^T without materializing the transpose
        s = lax.dot_general(q.astype(jnp.bfloat16), k.astype(jnp.bfloat16),
                            dimension_numbers=(((1,), (1,)), ((), ())),
                            preferred_element_type=jnp.float32)   # [N, N]
        s = s - jnp.max(s, axis=-1, keepdims=True)
        p = jnp.exp(s)
        p = p * pl.reciprocal(jnp.sum(p, axis=-1, keepdims=True), approx=True)
        outs.append(jnp.dot(p.astype(jnp.bfloat16), v.astype(jnp.bfloat16),
                            preferred_element_type=jnp.float32))  # [N, dh]
    # single lane-dense store of all heads
    o_ref[0] = jnp.concatenate(outs, axis=-1).astype(o_ref.dtype)


def attention(qkv, num_heads):
    """qkv: [B, N, 3*D] packed -> [B, N, D]."""
    B, N, D3 = qkv.shape
    D = D3 // 3
    dh = D // num_heads
    scale = 1.0 / (dh ** 0.5)
    return pl.pallas_call(
        functools.partial(_attn_kernel, num_heads=num_heads, head_dim=dh,
                          scale=scale),
        out_shape=jax.ShapeDtypeStruct((B, N, D), jnp.bfloat16),
        grid=(B,),
        in_specs=[pl.BlockSpec((1, N, D3), lambda b: (b, 0, 0))],
        out_specs=pl.BlockSpec((1, N, D), lambda b: (b, 0, 0)),
        compiler_params=_cparams("parallel"),
    )(qkv)


# ----------------------------------------------------------------------------
# MSE loss (row-tiled, accumulated across an "arbitrary" grid axis)
# ----------------------------------------------------------------------------
def _mse_kernel(p_ref, t_ref, o_ref, *, inv_count):
    @pl.when(pl.program_id(0) == 0)
    def _():
        o_ref[...] = jnp.zeros_like(o_ref)
    d = p_ref[...].astype(jnp.float32) - t_ref[...].astype(jnp.float32)
    part = jnp.sum(d * d, axis=-1, keepdims=True)      # [tm, 1]
    part = jnp.sum(part, axis=0, keepdims=True)        # [1, 1]
    o_ref[...] += part

    @pl.when(pl.program_id(0) == pl.num_programs(0) - 1)
    def _():
        o_ref[...] = o_ref[...] * inv_count


def mse_loss(pred, target):
    """pred, target: [M, D] -> scalar mean squared error."""
    M, D = pred.shape
    tm = _pick_tile(M, (1024, 512, 256, 128, 64, 32, 16, 8))
    out = pl.pallas_call(
        functools.partial(_mse_kernel, inv_count=1.0 / float(M * D)),
        out_shape=jax.ShapeDtypeStruct((1, 1), jnp.float32),
        grid=(M // tm,),
        in_specs=[pl.BlockSpec((tm, D), lambda i: (i, 0)),
                  pl.BlockSpec((tm, D), lambda i: (i, 0))],
        out_specs=pl.BlockSpec((1, 1), lambda i: (0, 0)),
        compiler_params=_cparams("arbitrary"),
    )(pred, target)
    return out[0, 0]


# ----------------------------------------------------------------------------
# ViT building blocks (Pallas kernels wired with thin JAX glue)
# ----------------------------------------------------------------------------
def transformer_block(p, x, num_heads):
    """x: [B, N, D] (f32 residual stream) -> [B, N, D]."""
    B, N, D = x.shape
    x2 = x.reshape(B * N, D)

    # LN1 + QKV projection (fused, bf16 out)
    qkv = fused_linear(x2, p["qkv_w"], p["qkv_b"],
                       ln=(p["ln1_g"], p["ln1_b"]),
                       out_dtype=jnp.bfloat16)                    # [B*N, 3D]
    # multi-head attention on the packed layout (no HBM transposes)
    a = attention(qkv.reshape(B, N, 3 * D), num_heads)            # [B, N, D]
    # out-proj + bias + residual (fused, f32 residual stream)
    x2 = fused_linear(a.reshape(B * N, D), p["proj_w"], p["proj_b"],
                      residual=x2, out_dtype=jnp.float32)

    # LN2 + fc1 + GELU (fused, bf16 hidden)
    h = fused_linear(x2, p["fc1_w"], p["fc1_b"],
                     ln=(p["ln2_g"], p["ln2_b"]),
                     activation="gelu", out_dtype=jnp.bfloat16)   # [B*N, 4D]
    # fc2 + bias + residual (fused)
    x2 = fused_linear(h, p["fc2_w"], p["fc2_b"],
                      residual=x2, out_dtype=jnp.float32)
    return x2.reshape(B, N, D)


def extract_patches(img, patch_size):
    """img: [B, C, H, W] NCHW -> [B, num_patches, C*p*p] (conv-as-matmul)."""
    B, C, H, W = img.shape
    p = patch_size
    x = img.reshape(B, C, H // p, p, W // p, p)
    x = x.transpose(0, 2, 4, 1, 3, 5)                 # [B, Hp, Wp, C, p, p]
    return x.reshape(B, (H // p) * (W // p), C * p * p)


def encoder_forward(params, img, patch_size, num_heads):
    patches = extract_patches(img, patch_size)        # [B, Np, C*p*p]
    B, Np, Pd = patches.shape
    D = params["patch_w"].shape[1]
    x = fused_linear(patches.reshape(B * Np, Pd),
                     params["patch_w"], params["patch_b"],
                     out_dtype=jnp.float32)
    x = x.reshape(B, Np, D) + params["pos_emb"]
    for blk in params["blocks"]:
        x = transformer_block(blk, x, num_heads)
    x = layernorm(x.reshape(B * Np, D), params["ln_g"], params["ln_b"])
    return x.reshape(B, Np, D)


def predictor_forward(params, x, num_heads):
    B, N, D = x.shape
    Dp = params["embed_w"].shape[1]
    h = fused_linear(x.reshape(B * N, D), params["embed_w"], params["embed_b"],
                     out_dtype=jnp.float32)
    h = h.reshape(B, N, Dp) + params["pos_emb"]
    for blk in params["blocks"]:
        h = transformer_block(blk, h, num_heads)
    # final LayerNorm fused into the output projection
    out = fused_linear(h.reshape(B * N, Dp), params["proj_w"], params["proj_b"],
                       ln=(params["ln_g"], params["ln_b"]),
                       out_dtype=jnp.float32)
    return out.reshape(B, N, D)


# ----------------------------------------------------------------------------
# Deterministic parameter init
# ----------------------------------------------------------------------------
def _init_block(key, dim, mlp_ratio=4):
    ks = jax.random.split(key, 4)
    hidden = dim * mlp_ratio
    s = 0.02
    return {
        "ln1_g": jnp.ones((dim,), jnp.float32),
        "ln1_b": jnp.zeros((dim,), jnp.float32),
        "qkv_w": s * jax.random.normal(ks[0], (dim, 3 * dim), jnp.float32),
        "qkv_b": jnp.zeros((3 * dim,), jnp.float32),
        "proj_w": s * jax.random.normal(ks[1], (dim, dim), jnp.float32),
        "proj_b": jnp.zeros((dim,), jnp.float32),
        "ln2_g": jnp.ones((dim,), jnp.float32),
        "ln2_b": jnp.zeros((dim,), jnp.float32),
        "fc1_w": s * jax.random.normal(ks[2], (dim, hidden), jnp.float32),
        "fc1_b": jnp.zeros((hidden,), jnp.float32),
        "fc2_w": s * jax.random.normal(ks[3], (hidden, dim), jnp.float32),
        "fc2_b": jnp.zeros((dim,), jnp.float32),
    }


def init_encoder(key, *, in_chans, patch_size, num_patches, embed_dim, depth):
    ks = jax.random.split(key, depth + 2)
    s = 0.02
    patch_dim = in_chans * patch_size * patch_size
    return {
        "patch_w": s * jax.random.normal(ks[0], (patch_dim, embed_dim), jnp.float32),
        "patch_b": jnp.zeros((embed_dim,), jnp.float32),
        "pos_emb": s * jax.random.normal(ks[1], (1, num_patches, embed_dim), jnp.float32),
        "blocks": [_init_block(ks[2 + i], embed_dim) for i in range(depth)],
        "ln_g": jnp.ones((embed_dim,), jnp.float32),
        "ln_b": jnp.zeros((embed_dim,), jnp.float32),
    }


def init_predictor(key, *, num_patches, embed_dim, pred_emb_dim, depth):
    ks = jax.random.split(key, depth + 3)
    s = 0.02
    return {
        "embed_w": s * jax.random.normal(ks[0], (embed_dim, pred_emb_dim), jnp.float32),
        "embed_b": jnp.zeros((pred_emb_dim,), jnp.float32),
        "pos_emb": s * jax.random.normal(ks[1], (1, num_patches, pred_emb_dim), jnp.float32),
        "blocks": [_init_block(ks[2 + i], pred_emb_dim) for i in range(depth)],
        "ln_g": jnp.ones((pred_emb_dim,), jnp.float32),
        "ln_b": jnp.zeros((pred_emb_dim,), jnp.float32),
        "proj_w": s * jax.random.normal(ks[-1], (pred_emb_dim, embed_dim), jnp.float32),
        "proj_b": jnp.zeros((embed_dim,), jnp.float32),
    }


# ----------------------------------------------------------------------------
# JEPA forward
# ----------------------------------------------------------------------------
def jepa_forward(enc_params, pred_params, current_observation, future_observation,
                 *, patch_size, num_heads):
    # observation encoder
    obs_rep = encoder_forward(enc_params, current_observation, patch_size, num_heads)
    # predictor (no action conditioning; see TODO at top)
    pred_future = predictor_forward(pred_params, obs_rep, num_heads)
    # frozen target encoder (state-dict copy of the observation encoder)
    # TODO(synk): if the reference keeps EMA target weights, plug them in here.
    target_rep = jax.lax.stop_gradient(
        encoder_forward(enc_params, future_observation, patch_size, num_heads))
    if pred_future.shape[1] > target_rep.shape[1]:
        pred_future = pred_future[:, :-1, :]
    B, N, D = target_rep.shape
    return mse_loss(pred_future.reshape(B * N, D), target_rep.reshape(B * N, D))


# ----------------------------------------------------------------------------
# Main
# ----------------------------------------------------------------------------
if __name__ == "__main__":
    # small, self-consistent configuration
    B, C, IMG, PATCH = 2, 3, 16, 8
    EMBED_DIM, NUM_HEADS, ENC_DEPTH = 32, 4, 2
    PRED_EMB_DIM, PRED_DEPTH = 32, 2
    NUM_PATCHES = (IMG // PATCH) ** 2

    root = jax.random.PRNGKey(0)
    k_enc, k_pred, k_x1, k_x2 = jax.random.split(root, 4)

    enc_params = init_encoder(k_enc, in_chans=C, patch_size=PATCH,
                              num_patches=NUM_PATCHES, embed_dim=EMBED_DIM,
                              depth=ENC_DEPTH)
    pred_params = init_predictor(k_pred, num_patches=NUM_PATCHES,
                                 embed_dim=EMBED_DIM, pred_emb_dim=PRED_EMB_DIM,
                                 depth=PRED_DEPTH)

    current_obs = jax.random.normal(k_x1, (B, C, IMG, IMG), jnp.float32)   # NCHW
    future_obs = jax.random.normal(k_x2, (B, C, IMG, IMG), jnp.float32)    # NCHW

    loss = jepa_forward(enc_params, pred_params, current_obs, future_obs,
                        patch_size=PATCH, num_heads=NUM_HEADS)
    loss = jax.block_until_ready(loss)
    assert loss.shape == () and jnp.isfinite(loss)
    print("KERNEL_OK")
</pallas_src>

<mosaic_0001>
module attributes {stable_mosaic.version = 11 : i64} {
  func.func @_fused_linear_kernel(%arg0: i32, %arg1: i32, %arg2: memref<8x192xf32, #tpu.memory_space<vmem>>, %arg3: memref<192x32xf32, #tpu.memory_space<vmem>>, %arg4: memref<1x32xf32, #tpu.memory_space<vmem>>, %arg5: memref<8x32xf32, #tpu.memory_space<vmem>>) attributes {dimension_semantics = [#tpu.dimension_semantics<parallel>, #tpu.dimension_semantics<parallel>], iteration_bounds = array<i64: 1, 1>, scalar_prefetch = 0 : i64, scratch_operands = 0 : i64, tpu.core_type = #tpu.core_type<tc>, window_params = [{transform_indices = @transform_0, window_bounds = array<i64: 8, 192>}, {transform_indices = @transform_1, window_bounds = array<i64: 192, 32>}, {transform_indices = @transform_2, window_bounds = array<i64: 1, 32>}, {transform_indices = @transform_3, window_bounds = array<i64: 8, 32>}]} {
    %c0 = arith.constant 0 : index
    %c0_0 = arith.constant 0 : index
    %0 = vector.load %arg2[%c0, %c0_0] : memref<8x192xf32, #tpu.memory_space<vmem>>, vector<8x192xf32>
    %1 = arith.truncf %0 : vector<8x192xf32> to vector<8x192xbf16>
    %c0_1 = arith.constant 0 : index
    %c0_2 = arith.constant 0 : index
    %2 = vector.load %arg3[%c0_1, %c0_2] : memref<192x32xf32, #tpu.memory_space<vmem>>, vector<192x32xf32>
    %3 = arith.truncf %2 : vector<192x32xf32> to vector<192x32xbf16>
    %cst = arith.constant dense<0.000000e+00> : vector<8x32xf32>
    %4 = tpu.matmul %1, %3, %cst {dimension_numbers = #tpu.dot_dimension_numbers<[1], [0], [0], [1], [0, 0, 1, 1], [], []>} : vector<8x192xbf16>, vector<192x32xbf16>, vector<8x32xf32> -> vector<8x32xf32>
    %c0_3 = arith.constant 0 : index
    %c0_4 = arith.constant 0 : index
    %5 = vector.load %arg4[%c0_3, %c0_4] : memref<1x32xf32, #tpu.memory_space<vmem>>, vector<1x32xf32>
    %6 = vector.broadcast %5 : vector<1x32xf32> to vector<8x32xf32>
    %7 = arith.addf %4, %6 : vector<8x32xf32>
    %c0_5 = arith.constant 0 : index
    %c0_6 = arith.constant 0 : index
    %8 = vector.load %arg5[%c0_5, %c0_6] : memref<8x32xf32, #tpu.memory_space<vmem>>, vector<8x32xf32>
    tpu.vector_store %arg5[%c0_5, %c0_6], %7 {strides = array<i32>} : memref<8x32xf32, #tpu.memory_space<vmem>>, vector<8x32xf32>,
    return
  }
  func.func @transform_0(%arg0: i32, %arg1: i32) -> (i32, i32) {
    %c0_i32 = arith.constant 0 : i32
    %c0_i32_0 = arith.constant 0 : i32
    return %arg0, %c0_i32 : i32, i32
  }
  func.func @transform_1(%arg0: i32, %arg1: i32) -> (i32, i32) {
    %c0_i32 = arith.constant 0 : i32
    %c0_i32_0 = arith.constant 0 : i32
    return %c0_i32, %arg1 : i32, i32
  }
  func.func @transform_2(%arg0: i32, %arg1: i32) -> (i32, i32) {
    %c0_i32 = arith.constant 0 : i32
    %c0_i32_0 = arith.constant 0 : i32
    return %c0_i32, %arg1 : i32, i32
  }
  func.func @transform_3(%arg0: i32, %arg1: i32) -> (i32, i32) {
    %c0_i32 = arith.constant 0 : i32
    return %arg0, %arg1 : i32, i32
  }
}

</mosaic_0001>

<bundles_post_ra>
// kernel: tpu_custom_call.1
= control target key start
LH: loop header
LB: loop body
LE: loop exit
PB: predicated region body
PF: predicated region fallthrough
CT: control target
= control target key end

     0   :  { %v151_v3 = vmov 0   ;;  %vm63_vm0 = vcmask 523264   ;;  %s266_s0 = inlined_call_operand.vmem [shape: f32[8,192], index: 0, kind: input, shape index: {}]   ;;  %s267_s1 = inlined_call_operand.vmem [shape: f32[192,32], index: 1, kind: input, shape index: {}]   ;;  %s268_s2 = inlined_call_operand.vmem [shape: f32[1,32], index: 2, kind: input, shape index: {}]   ;;  %s269_s3 = inlined_call_operand.hbm [shape: f32[8,32], index: 3, kind: output, shape index: {}]  }
   0x1   :  { %v20_v0 = vld [vmem:[%s267_s1] sm:$0xff]  ;;  %v21_v1 = vld [vmem:[%s267_s1 + $0x8] sm:$0xff]  ;;  %v22_v2 = vld [vmem:[%s267_s1 + $0x10] sm:$0xff]  ;;  %67 = vmatprep.subr.bf16.mxu0 %v151_v3 }
   0x2   :  { %v44_v4 = vpack.c.bf16 %v21_v1, %v20_v0  ;;  %v23_v5 = vld [vmem:[%s267_s1 + $0x18] sm:$0xff]  ;;  %v24_v7 = vld [vmem:[%s267_s1 + $0x20] sm:$0xff]  ;;  %v25_v8 = vld [vmem:[%s267_s1 + $0x28] sm:$0xff] }
   0x3   :  { %v45_v6 = vpack.c.bf16 %v23_v5, %v22_v2  ;;  %v46_v9 = vpack.c.bf16 %v25_v8, %v24_v7  ;;  %v26_v10 = vld [vmem:[%s267_s1 + $0x30] sm:$0xff]  ;;  %v27_v11 = vld [vmem:[%s267_s1 + $0x38] sm:$0xff]  ;;  %v17_v12 = vld [vmem:[%s266_s0 + $0x8] sm:$0xff] }
   0x4   :  { %68 = vmatpush1.bf16.msra.mxu0 %v44_v4  ;;  %v19_v13 = vpack.c.bf16 %v17_v12, %v17_v12 }
   0x5   :  { %69 = vmatprep.subr.bf16.mxu0 %v151_v3 }
   0x8   :  { %70 = vmatpush1.bf16.msra.mxu0 %v45_v6 }
   0x9   :  { %71 = vmatprep.subr.bf16.mxu0 %v151_v3 }
   0xa   :  { %8 = vsyncpa [#allocation3], 0  ;;  %v47_v14 = vpack.c.bf16 %v27_v11, %v26_v10  ;;  %124 = vmatprep.mubr.msk.bf16.mxu0 %vm63_vm0, %v19_v13  ;;  %v28_v15 = vld [vmem:[%s267_s1 + $0x40] sm:$0xff]  ;;  %v29_v16 = vld [vmem:[%s267_s1 + $0x48] sm:$0xff]  ;;  %s152_s12 = smov [#allocation2]   ;;  %vm107_vm1 = vcmask 261120  }
   0xb   :  { %v48_v17 = vpack.c.bf16 %v29_v16, %v28_v15  ;;  %v30_v18 = vld [vmem:[%s267_s1 + $0x50] sm:$0xff]  ;;  %v31_v19 = vld [vmem:[%s267_s1 + $0x58] sm:$0xff]  ;;  %v32_v21 = vld [vmem:[%s267_s1 + $0x60] sm:$0xff]  ;;  %s115_s13 = sshll.u32 %s152_s12, 4  ;;  %s116_s13 = int_to_ptr.vmem [resolvable:$true] %s115_s13 }
   0xc   :  { %72 = vmatpush1.bf16.msra.mxu0 %v46_v9  ;;  %v49_v20 = vpack.c.bf16 %v31_v19, %v30_v18  ;;  %v33_v22 = vld [vmem:[%s267_s1 + $0x68] sm:$0xff]  ;;  %v34_v24 = vld [vmem:[%s267_s1 + $0x70] sm:$0xff]  ;;  %v35_v25 = vld [vmem:[%s267_s1 + $0x78] sm:$0xff]  ;;  %p132_p1 = scmp.lt.s32.totalorder %s116_s13, %s116_s13 }
   0xd   :  { %73 = vmatprep.subr.bf16.mxu0 %v151_v3  ;;  %v50_v23 = vpack.c.bf16 %v33_v22, %v32_v21  ;;  %v51_v26 = vpack.c.bf16 %v35_v25, %v34_v24  ;;  %v36_v27 = vld [vmem:[%s267_s1 + $0x80] sm:$0xff]  ;;  %v37_v28 = vld [vmem:[%s267_s1 + $0x88] sm:$0xff]  ;;  %v38_v30 = vld [vmem:[%s267_s1 + $0x90] sm:$0xff] }
   0xe   :  { %v52_v29 = vpack.c.bf16 %v37_v28, %v36_v27  ;;  %v39_v31 = vld [vmem:[%s267_s1 + $0x98] sm:$0xff]  ;;  %v40_v33 = vld [vmem:[%s267_s1 + $0xa0] sm:$0xff]  ;;  %v41_v34 = vld [vmem:[%s267_s1 + $0xa8] sm:$0xff] }
   0xf   :  { %v53_v32 = vpack.c.bf16 %v39_v31, %v38_v30  ;;  %v54_v35 = vpack.c.bf16 %v41_v34, %v40_v33  ;;  %v42_v36 = vld [vmem:[%s267_s1 + $0xb0] sm:$0xff]  ;;  %v43_v37 = vld [vmem:[%s267_s1 + $0xb8] sm:$0xff]  ;;  %v16_v39 = vld [vmem:[%s266_s0] sm:$0xff]  ;;  %s127_s1 = scalar_lea.vmem %s116_s13, 128 }
  0x10   :  { %74 = vmatpush1.bf16.msra.mxu0 %v47_v14  ;;  %v55_v38 = vpack.c.bf16 %v43_v37, %v42_v36  ;;  %v18_v40 = vpack.c.bf16 %v16_v39, %v16_v39  ;;  %v123_v41 = vld [vmem:[%s268_s2] ss:$0 sm:$0xff]  ;;  %p128_p0 = scmp.ne.s32.totalorder %s116_s13, %s127_s1  ;;  %p133_p2 = scmp.lt.s32.totalorder %s127_s1, %s127_s1 }
  0x11   :  { %75 = vmatprep.subr.bf16.mxu0 %v151_v3 }
  0x12   :  { %p134_p3 = por %p133_p2, %p132_p1 }
  0x14   :  { %76 = vmatpush1.bf16.msra.mxu0 %v48_v17  ;;  %p135_p4 = pnand %p134_p3, %p128_p0 }
  0x15   :  { %77 = vmatprep.subr.bf16.mxu0 %v151_v3 }
  0x18   :  { %78 = vmatpush1.bf16.msra.mxu0 %v49_v20 }
  0x19   :  { %79 = vmatprep.subr.bf16.mxu0 %v151_v3 }
  0x1c   :  { %80 = vmatpush1.bf16.msra.mxu0 %v50_v23 }
  0x1d   :  { %81 = vmatprep.subr.bf16.mxu0 %v151_v3 }
  0x20   :  { %82 = vmatpush1.bf16.msra.mxu0 %v51_v26 }
  0x21   :  { %83 = vmatprep.subr.bf16.mxu0 %v151_v3 }
  0x24   :  { %84 = vmatpush1.bf16.msra.mxu0 %v52_v29 }
  0x25   :  { %85 = vmatprep.subr.bf16.mxu0 %v151_v3 }
  0x28   :  { %86 = vmatpush1.bf16.msra.mxu0 %v53_v32 }
  0x29   :  { %87 = vmatprep.subr.bf16.mxu0 %v151_v3 }
  0x2c   :  { %88 = vmatpush1.bf16.msra.mxu0 %v54_v35 }
  0x2d   :  { %89 = vmatprep.subr.bf16.mxu0 %v151_v3 }
  0x30   :  { %90 = vmatpush1.bf16.msra.mxu0 %v55_v38 }
  0x33   :  { %100 = vmatmul.mubr.bf16.vlgmr.msra.gmra.mrb[0].mxu0 %v18_v40 }
 0x106   :  { %v101_v42 = vpop.f32.mrb[0].mxu0 }
 0x107   :  { %v102_v43 = vadd.f32 %v123_v41, %v101_v42  ;;  %v103_v44 = vpop.f32.mrb[1].mxu0 }
 0x108   :  { %v104_v45 = vpop.f32.mrb[2].mxu0 }
 0x109   :  { %v105_v46 = vpop.f32.mrb[3].mxu0  ;;  %108 = vst.msk [vmem:[#allocation2] sm:$0xff] %vm107_vm1, %v102_v43 }
 0x10a   :  { %138 = shalt.err (!%p135_p4)
}
 0x10b   :  { %s139_s2 = scalar_lea.hbm %s269_s3, 128 }
 0x10c   :  { %p140_p5 = scmp.ne.s32.totalorder %s269_s3, %s139_s2  ;;  %p143_p6 = scmp.lt.u32.totalorder %s139_s2, %s269_s3 }
 0x10e   :  { %p145_p7 = pnand %p143_p6, %p140_p5 }
 0x110   :  { %148 = shalt.err (!%p145_p7)
}
 0x111   :  { %118 = dma.vmem_to_hbm [thread:$0]  %s116_s13, 128, %s269_s3, [#allocation3]  }
 0x112   :  { %149 = dma.done.wait [#allocation3], 128  }
 0x113   :  { %150 = vsyncadd [#allocation3], 4294967168 }
 0x114   :  { %122 = vsyncpa [#allocation3], 1 }

</bundles_post_ra>
